<compile_context>
chip_gen: v7x
topology: tpu7x:2x2x1
jax: 0.10.0
libtpu: 0.0.40
codegen_flags: <defaults>
</compile_context>

<pallas_src>
import functools

import jax
import jax.numpy as jnp
from jax.experimental import pallas as pl
from jax.experimental.pallas import tpu as pltpu


# ------------------------------ helpers -------------------------------------
def _round_up(x, m):
    return (x + m - 1) // m * m


def _vmem_capacity_bytes():
    """Per-core VMEM capacity; conservative (v7x = 64 MiB) if undetectable."""
    try:
        info = pltpu.get_tpu_info()
        cap = int(getattr(info, "vmem_capacity_bytes"))
        if cap > 0:
            return cap
    except Exception:
        pass
    return 64 * 1024 * 1024


# ----------------------------- Pallas kernels --------------------------------
def _linear_kernel_single_k(x_ref, w_ref, b_ref, o_ref, *, compute_dtype):
    # x_ref: (tm, D)   w_ref: (D, tn)   b_ref: (1, tn) f32   o_ref: (tm, tn)
    x = x_ref[...].astype(compute_dtype)
    acc = jnp.dot(x, w_ref[...], preferred_element_type=jnp.float32)
    o_ref[...] = (acc + b_ref[...]).astype(o_ref.dtype)


def _linear_kernel_k_blocked(x_ref, w_ref, b_ref, o_ref, acc_ref, *,
                             tk, compute_dtype):
    # x_ref: (tm, D) resident   w_ref: (tk, tn)   b_ref: (1, tn)   acc: (tm, tn) f32
    k = pl.program_id(2)
    nk = pl.num_programs(2)

    @pl.when(k == 0)
    def _init():
        acc_ref[...] = jnp.zeros_like(acc_ref)

    x_blk = x_ref[:, pl.ds(k * tk, tk)].astype(compute_dtype)
    acc_ref[...] += jnp.dot(x_blk, w_ref[...], preferred_element_type=jnp.float32)

    # NOTE: no pl.program_id() inside the pl.when body (interpret-mode safe).
    @pl.when(k == nk - 1)
    def _finalize():
        o_ref[...] = (acc_ref[...] + b_ref[...]).astype(o_ref.dtype)


# ----------------------------- wrapper ---------------------------------------
def pallas_linear_wt(x, w_t, bias, *, tm_max=512, tn_max=None, tk_max=2048,
                     tk=None, compute_dtype=jnp.bfloat16, out_dtype=jnp.float32):
    """out[M, V] = x[M, D] @ w_t[D, V] + bias[V]  (PyTorch nn.Linear semantics,
    weight pre-transposed to [D, V] once, outside the hot path)."""
    M, D = x.shape
    D_w, V = w_t.shape
    assert D == D_w, (D, D_w)
    assert bias.shape == (V,), bias.shape

    if compute_dtype is None:
        compute_dtype = w_t.dtype
    if w_t.dtype != compute_dtype:
        w_t = w_t.astype(compute_dtype)          # persistent bf16 copy recommended
    bias2d = bias.reshape(1, V).astype(jnp.float32)

    x_bytes = jnp.dtype(x.dtype).itemsize
    w_bytes = jnp.dtype(w_t.dtype).itemsize
    out_bytes = jnp.dtype(out_dtype).itemsize

    cap = _vmem_capacity_bytes()
    budget = int(0.70 * cap)
    if tn_max is None:
        # v5e/v6e (128 MiB VMEM) can afford wider vocab tiles than v7x (64 MiB)
        tn_max = 1024 if cap >= (100 << 20) else 512

    # --- tile selection (cdiv grids; edge blocks are clipped, never padded) ---
    tm = min(tm_max, _round_up(M, 8))
    tn = min(tn_max, _round_up(V, 128))

    def vmem_est(tm_, tn_, tk_, kblocked):
        b = 2 * tm_ * D * x_bytes              # resident x row block (dbl-buffered)
        b += 2 * tn_ * tk_ * w_bytes           # streamed weight tile
        b += 2 * 8 * max(tn_, 128) * 4         # bias tile (sublane-padded)
        b += 2 * tm_ * tn_ * out_bytes         # output tile
        if kblocked:
            b += tm_ * tn_ * 4                 # f32 accumulator scratch
        return b

    if tk is None:
        if vmem_est(tm, tn, D, False) <= budget:
            tk = D                              # fast path: no K grid axis
        else:
            tk = max(128, min(_round_up(D, 128) // 2, _round_up(tk_max, 128)))
            tk -= tk % 128
            while tk > 128 and vmem_est(tm, tn, tk, True) > budget:
                tk = max(128, (tk // 2) - (tk // 2) % 128)
            while tn > 128 and vmem_est(tm, tn, tk, True) > budget:
                tn = max(128, (tn // 2) - (tn // 2) % 128)
            while tm > 8 and vmem_est(tm, tn, tk, True) > budget:
                tm = max(8, _round_up(tm // 2, 8))

    single_k = tk >= D
    if single_k:
        tk = D
    else:
        d_pad = _round_up(D, tk)
        if d_pad != D:
            # zero-pad the contraction dim so every K tile is fully valid
            x = jnp.pad(x, ((0, 0), (0, d_pad - D)))
            w_t = jnp.pad(w_t, ((0, d_pad - D), (0, 0)))
            D = d_pad

    est = vmem_est(tm, tn, tk, not single_k)
    vmem_limit = int(min(int(0.9 * cap), max(est + (16 << 20), 32 << 20)))

    grid_m = pl.cdiv(M, tm)
    grid_n = pl.cdiv(V, tn)

    if single_k:
        grid = (grid_m, grid_n)
        in_specs = [
            # x row block: index independent of j -> loaded once per M tile and
            # kept resident while the weight streams past it.
            pl.BlockSpec((tm, D), lambda i, j: (i, 0)),
            # full-depth weight strip, streamed over the vocab axis.
            pl.BlockSpec((D, tn), lambda i, j: (0, j)),
            # bias tiled with the vocab axis (tiny DMA per j change).
            pl.BlockSpec((1, tn), lambda i, j: (0, j)),
        ]
        out_specs = pl.BlockSpec((tm, tn), lambda i, j: (i, j))
        scratch_shapes = ()
        kernel = functools.partial(_linear_kernel_single_k,
                                   compute_dtype=compute_dtype)
        dim_sem = ("parallel", "parallel")
    else:
        grid = (grid_m, grid_n, D // tk)
        in_specs = [
            pl.BlockSpec((tm, D), lambda i, j, k: (i, 0)),     # resident, sliced in-kernel
            pl.BlockSpec((tk, tn), lambda i, j, k: (k, j)),    # streamed weight tile
            pl.BlockSpec((1, tn), lambda i, j, k: (0, j)),     # bias tile
        ]
        out_specs = pl.BlockSpec((tm, tn), lambda i, j, k: (i, j))
        scratch_shapes = (pltpu.VMEM((tm, tn), jnp.float32),)
        kernel = functools.partial(_linear_kernel_k_blocked,
                                   tk=tk, compute_dtype=compute_dtype)
        dim_sem = ("parallel", "parallel", "arbitrary")

    return pl.pallas_call(
        kernel,
        out_shape=jax.ShapeDtypeStruct((M, V), out_dtype),
        grid_spec=pltpu.PrefetchScalarGridSpec(
            num_scalar_prefetch=0,
            grid=grid,
            in_specs=in_specs,
            out_specs=out_specs,
            scratch_shapes=scratch_shapes,
        ),
        compiler_params=pltpu.CompilerParams(
            dimension_semantics=dim_sem,
            vmem_limit_bytes=vmem_limit,
        ),
    )(x, w_t, bias2d)


# --------------------------- Model (glue + kernel) ---------------------------
class MaskLanguageModelPallas:
    """JAX/Pallas port of MaskLanguageModel with a synthetic sentenceRep.

    sentenceRep(src, positions) := token_embedding[src] + pos_embedding[positions]
    target := nn.Linear(D, V), weight tied to the token embedding when
    share_out_embedd=True (mirroring `self.target.weight = ...embedding.weight`).
    """

    def __init__(self, key, *, vocab_size, hidden_dim, max_pos,
                 share_out_embedd=True, pad_index=0, dtype=jnp.float32):
        self.input_dim = hidden_dim
        self.vocab_size = vocab_size
        self.pad_index = pad_index

        k_emb, k_pos, k_w, k_b = jax.random.split(key, 4)
        self.embedding = jax.random.normal(k_emb, (vocab_size, hidden_dim), dtype) * 0.02
        self.pos_embedding = jax.random.normal(k_pos, (max_pos, hidden_dim), dtype) * 0.02
        if share_out_embedd:
            self.target_w = self.embedding           # [V, D] (PyTorch Linear layout, tied)
        else:
            self.target_w = jax.random.normal(k_w, (vocab_size, hidden_dim), dtype) * 0.02
        self.target_b = jax.random.normal(k_b, (vocab_size,), dtype) * 0.02
        # One-time MXU-friendly copy of the LM-head weight: transposed to
        # [D, V] (contraction dim first, no per-tile XLU transposes) and cast
        # to bf16 (halves HBM weight streaming, feeds the MXU at bf16 rate).
        # TODO(synk): optional fp8 copy + per-channel scales for v7x.
        self.target_wt = jnp.asarray(self.target_w.T, dtype=jnp.bfloat16)

    # synthetic sentenceRep forward (glue: gathers)
    def sentence_rep(self, src, positions=None):
        B, S = src.shape
        if positions is None:
            positions = jnp.broadcast_to(jnp.arange(S), (B, S))
        rep = jnp.take(self.embedding, src, axis=0) + jnp.take(
            self.pos_embedding, positions, axis=0)
        return rep, None

    def __call__(self, src, lang_id=None, pred_mask=None, positions=None):
        rep, _ = self.sentence_rep(src, positions=positions)    # [B, S, D]
        B, S, D = rep.shape

        if pred_mask is not None:
            # tensor = sentence_rep[pred_mask...].view(-1, D): data-dependent
            # size, so the boolean-mask gather is done eagerly in glue; the
            # matmul stays in Pallas.
            # TODO(synk): replace with a fixed-capacity scalar-prefetched row
            # gather (PrefetchScalarGridSpec + pl.Element) to stay jittable.
            idx = jnp.nonzero(pred_mask.reshape(-1))[0]          # eager (not jitted)
            gathered = rep.reshape(-1, D)[idx]                   # [N, D]
            return pallas_linear_wt(gathered, self.target_wt, self.target_b)
        else:
            flat = rep.reshape(B * S, D)
            out = pallas_linear_wt(flat, self.target_wt, self.target_b)
            return out.reshape(B, S, self.vocab_size)            # [B, S, V]


# ---------------------------------- main -------------------------------------
if __name__ == "__main__":
    B, S, D, V = 2, 8, 32, 256
    key = jax.random.PRNGKey(0)
    k_param, k_src, k_mask, k_big = jax.random.split(key, 4)

    model = MaskLanguageModelPallas(
        k_param, vocab_size=V, hidden_dim=D, max_pos=S,
        share_out_embedd=True, pad_index=0)

    src = jax.random.randint(k_src, (B, S), 0, V, dtype=jnp.int32)
    pred_mask = jax.random.bernoulli(k_mask, 0.5, (B, S))
    pred_mask = pred_mask.at[0, 0].set(True)        # guarantee a non-empty masked path

    # Reference with the same bf16-rounded operands the kernel feeds the MXU.
    rep, _ = model.sentence_rep(src)
    rep_bf = rep.astype(jnp.bfloat16).astype(jnp.float32)
    w_bf = model.target_wt.astype(jnp.float32)      # [D, V]
    ref_full = rep_bf @ w_bf + model.target_b

    # Path 1: no pred_mask -> [B, S, V]
    out_full = jax.block_until_ready(model(src))
    assert out_full.shape == (B, S, V)
    assert jnp.allclose(out_full, ref_full, atol=1e-2, rtol=1e-2), \
        float(jnp.max(jnp.abs(out_full - ref_full)))

    # Path 2: with pred_mask -> [N_masked, V]
    out_masked = jax.block_until_ready(model(src, pred_mask=pred_mask))
    idx = jnp.nonzero(pred_mask.reshape(-1))[0]
    ref_masked = ref_full.reshape(-1, V)[idx]
    assert out_masked.shape == ref_masked.shape
    assert jnp.allclose(out_masked, ref_masked, atol=1e-2, rtol=1e-2)

    # Multi-tile sanity check: uneven M (272 -> two clipped 256-row blocks),
    # ragged V (1000 -> clipped edge tile on the vocab axis) and a forced K
    # split (tk=256 on D=512) exercising the accumulator kernel.
    Mx, Dx, Vx = 272, 512, 1000
    kx, kw, kb = jax.random.split(k_big, 3)
    x_big = jax.random.normal(kx, (Mx, Dx), jnp.float32)
    wt_big = (jax.random.normal(kw, (Dx, Vx), jnp.float32) * 0.05).astype(jnp.bfloat16)
    b_big = jax.random.normal(kb, (Vx,), jnp.float32)
    out_big = jax.block_until_ready(
        pallas_linear_wt(x_big, wt_big, b_big, tm_max=256, tk=256))
    ref_big = (x_big.astype(jnp.bfloat16).astype(jnp.float32)
               @ wt_big.astype(jnp.float32) + b_big)
    assert out_big.shape == (Mx, Vx)
    assert jnp.allclose(out_big, ref_big, atol=3e-2, rtol=3e-2), \
        float(jnp.max(jnp.abs(out_big - ref_big)))

    print("KERNEL_OK")
</pallas_src>

<mosaic_0001>
module attributes {stable_mosaic.version = 11 : i64} {
  func.func @_linear_kernel_single_k(%arg0: i32, %arg1: i32, %arg2: memref<16x32xf32, #tpu.memory_space<vmem>>, %arg3: memref<32x256xbf16, #tpu.memory_space<vmem>>, %arg4: memref<1x256xf32, #tpu.memory_space<vmem>>, %arg5: memref<16x256xf32, #tpu.memory_space<vmem>>) attributes {dimension_semantics = [#tpu.dimension_semantics<parallel>, #tpu.dimension_semantics<parallel>], iteration_bounds = array<i64: 1, 1>, scalar_prefetch = 0 : i64, scratch_operands = 0 : i64, tpu.core_type = #tpu.core_type<tc>, window_params = [{transform_indices = @transform_0, window_bounds = array<i64: 16, 32>}, {transform_indices = @transform_1, window_bounds = array<i64: 32, 256>}, {transform_indices = @transform_2, window_bounds = array<i64: 1, 256>}, {transform_indices = @transform_3, window_bounds = array<i64: 16, 256>}]} {
    %c0 = arith.constant 0 : index
    %c0_0 = arith.constant 0 : index
    %0 = vector.load %arg2[%c0, %c0_0] : memref<16x32xf32, #tpu.memory_space<vmem>>, vector<16x32xf32>
    %1 = arith.truncf %0 : vector<16x32xf32> to vector<16x32xbf16>
    %c0_1 = arith.constant 0 : index
    %c0_2 = arith.constant 0 : index
    %2 = vector.load %arg3[%c0_1, %c0_2] : memref<32x256xbf16, #tpu.memory_space<vmem>>, vector<32x256xbf16>
    %cst = arith.constant dense<0.000000e+00> : vector<16x256xf32>
    %3 = tpu.matmul %1, %2, %cst {dimension_numbers = #tpu.dot_dimension_numbers<[1], [0], [0], [1], [0, 0, 1, 1], [], []>} : vector<16x32xbf16>, vector<32x256xbf16>, vector<16x256xf32> -> vector<16x256xf32>
    %c0_3 = arith.constant 0 : index
    %c0_4 = arith.constant 0 : index
    %4 = vector.load %arg4[%c0_3, %c0_4] : memref<1x256xf32, #tpu.memory_space<vmem>>, vector<1x256xf32>
    %5 = vector.broadcast %4 : vector<1x256xf32> to vector<16x256xf32>
    %6 = arith.addf %3, %5 : vector<16x256xf32>
    %c0_5 = arith.constant 0 : index
    %c0_6 = arith.constant 0 : index
    %7 = vector.load %arg5[%c0_5, %c0_6] : memref<16x256xf32, #tpu.memory_space<vmem>>, vector<16x256xf32>
    tpu.vector_store %arg5[%c0_5, %c0_6], %6 {strides = array<i32>} : memref<16x256xf32, #tpu.memory_space<vmem>>, vector<16x256xf32>,
    return
  }
  func.func @transform_0(%arg0: i32, %arg1: i32) -> (i32, i32) {
    %c0_i32 = arith.constant 0 : i32
    %c0_i32_0 = arith.constant 0 : i32
    return %arg0, %c0_i32 : i32, i32
  }
  func.func @transform_1(%arg0: i32, %arg1: i32) -> (i32, i32) {
    %c0_i32 = arith.constant 0 : i32
    %c0_i32_0 = arith.constant 0 : i32
    return %c0_i32, %arg1 : i32, i32
  }
  func.func @transform_2(%arg0: i32, %arg1: i32) -> (i32, i32) {
    %c0_i32 = arith.constant 0 : i32
    %c0_i32_0 = arith.constant 0 : i32
    return %c0_i32, %arg1 : i32, i32
  }
  func.func @transform_3(%arg0: i32, %arg1: i32) -> (i32, i32) {
    %c0_i32 = arith.constant 0 : i32
    return %arg0, %arg1 : i32, i32
  }
}

</mosaic_0001>

<bundles_post_ra>
// kernel: tpu_custom_call.1
= control target key start
LH: loop header
LB: loop body
LE: loop exit
PB: predicated region body
PF: predicated region fallthrough
CT: control target
= control target key end

     0   :  { %8 = vsyncpa [#allocation3], 0  ;;  %s310_s0 = inlined_call_operand.hbm [shape: f32[16,32], index: 0, kind: input, shape index: {}]   ;;  %s311_s1 = inlined_call_operand.hbm [shape: bf16[32,256], index: 1, kind: input, shape index: {}]   ;;  %s312_s2 = inlined_call_operand.vmem [shape: f32[1,256], index: 2, kind: input, shape index: {}]   ;;  %s313_s3 = inlined_call_operand.hbm [shape: f32[16,256], index: 3, kind: output, shape index: {}]  }
   0x1   :  { %9 = vsyncpa [#allocation6], 0 }
   0x2   :  { %10 = vsyncpa [#allocation4], 0  ;;  %s243_s12 = smov [#allocation2]   ;;  %s171_s16 = scalar_lea.hbm %s310_s0, 256 }
   0x3   :  { %s16_s13 = sshll.u32 %s243_s12, 4  ;;  %p172_p0 = scmp.ne.s32.totalorder %s310_s0, %s171_s16  ;;  %s17_s13 = int_to_ptr.vmem [resolvable:$true] %s16_s13 }
   0x4   :  { %p175_p1 = scmp.lt.u32.totalorder %s171_s16, %s310_s0 }
   0x6   :  { %p177_p2 = pnand %p175_p1, %p172_p0 }
   0x8   :  { %180 = shalt.err (!%p177_p2)
}
   0x9   :  { %s181_s21 = scalar_lea.vmem %s17_s13, 256  ;;  %p186_p4 = scmp.lt.s32.totalorder %s17_s13, %s17_s13 }
   0xa   :  { %p182_p3 = scmp.ne.s32.totalorder %s17_s13, %s181_s21  ;;  %p187_p5 = scmp.lt.s32.totalorder %s181_s21, %s181_s21 }
   0xc   :  { %p188_p6 = por %p187_p5, %p186_p4 }
   0xe   :  { %p189_p7 = pnand %p188_p6, %p182_p3 }
  0x10   :  { %192 = shalt.err (!%p189_p7)
}
  0x11   :  { %s244_s22 = smov 128   ;;  %s245_s23 = smov 8  }
  0x12   :  { %22 = dma.hbm_to_vmem [thread:$0]  %s310_s0, 256, %s17_s13, [#allocation3], %s244_s22, %s244_s22, %s245_s23  }
  0x13   :  { %s246_s26 = smov [#allocation5]   ;;  %s193_s30 = scalar_lea.hbm %s311_s1, 512 }
  0x14   :  { %s28_s27 = sshll.u32 %s246_s26, 4  ;;  %p194_p8 = scmp.ne.s32.totalorder %s311_s1, %s193_s30  ;;  %s29_s27 = int_to_ptr.vmem [resolvable:$true] %s28_s27 }
  0x15   :  { %p197_p9 = scmp.lt.u32.totalorder %s193_s30, %s311_s1 }
  0x17   :  { %p199_p10 = pnand %p197_p9, %p194_p8 }
  0x19   :  { %202 = shalt.err (!%p199_p10)
}
  0x1a   :  { %s203_s8 = scalar_lea.vmem %s29_s27, 512  ;;  %p208_p12 = scmp.lt.s32.totalorder %s29_s27, %s29_s27 }
  0x1b   :  { %p204_p11 = scmp.ne.s32.totalorder %s29_s27, %s203_s8  ;;  %p209_p13 = scmp.lt.s32.totalorder %s203_s8, %s203_s8 }
  0x1d   :  { %p210_p0 = por %p209_p13, %p208_p12 }
  0x1f   :  { %p211_p1 = pnand %p210_p0, %p204_p11 }
  0x21   :  { %214 = shalt.err (!%p211_p1)
}
  0x22   :  { %34 = dma.hbm_to_vmem [thread:$0]  %s311_s1, 512, %s29_s27, [#allocation6], %s244_s22, %s244_s22, %s245_s23  }
  0x23   :  { %237 = dma.done.wait [#allocation3], 256  }
  0x24   :  { %238 = vsyncadd [#allocation3], 4294967040 }
  0x25   :  { %239 = dma.done.wait [#allocation6], 512  }
  0x26   :  { %240 = vsyncadd [#allocation6], 4294966784  ;;  %v247_v0 = vmov 0   ;;  %v165_v1 = vld [vmem:[#allocation5 + $0x4] ss:$8 sps:$4 sm:$0xff]   ;;  %v44_v5 = vld [vmem:[#allocation2] sm:$0xff]  ;;  %v53_v8 = vlaneseq }
  0x27   :  { %119 = vmatprep.mubr.bf16.mxu0 %v247_v0  ;;  %v167_v2 = vld [vmem:[#allocation5] ss:$8 sps:$4 sm:$0xff]   ;;  %87 = vmatprep.subr.bf16.mxu0 %v165_v1  ;;  %v168_v3 = vld [vmem:[#allocation5 + $0x14] ss:$8 sps:$4 sm:$0xff]   ;;  %v170_v4 = vld [vmem:[#allocation5 + $0x10] ss:$8 sps:$4 sm:$0xff]  }
  0x28   :  { %88 = vmatpush1.bf16.msra.mxu0 %v167_v2  ;;  %v45_v6 = vld [vmem:[#allocation2 + $0x8] sm:$0xff]  ;;  %vm83_vm0 = vcmask 261120   ;;  %v54_v9 = vshrl.u32 %v53_v8, 7  ;;  %v51_v11 = vld [vmem:[%s312_s2] sm:$0x3]  ;;  %s248_s11 = smov [#allocation7]  }
  0x29   :  { %89 = vmatprep.subr.bf16.mxu0 %v168_v3  ;;  %v46_v7 = vpack.c.bf16 %v45_v6, %v44_v5  ;;  %s139_s12 = sshll.u32 %s248_s11, 4  ;;  %s140_s12 = int_to_ptr.vmem [resolvable:$true] %s139_s12 }
  0x2a   :  { %v55_v10 = vsub.s32 0, %v54_v9  ;;  %v59_v12 = vsub.s32 1, %v54_v9  ;;  %s215_s13 = scalar_lea.vmem %s140_s12, 512  ;;  %p220_p3 = scmp.lt.s32.totalorder %s140_s12, %s140_s12 }
  0x2b   :  { %p216_p2 = scmp.ne.s32.totalorder %s140_s12, %s215_s13  ;;  %p221_p4 = scmp.lt.s32.totalorder %s215_s13, %s215_s13 }
  0x2c   :  { %90 = vmatpush1.bf16.msra.mxu0 %v170_v4  ;;  %v56_v13 = vrot.slane %v51_v11, %v55_v10  ;;  %v60_v14 = vrot.slane %v51_v11, %v59_v12 }
  0x2d   :  { %p222_p5 = por %p221_p4, %p220_p3 }
  0x2f   :  { %156 = vmatmul.mubr.msk.bf16.vlgmr.msra.gmra.mrb[0].mxu0 %vm83_vm0, %v46_v7  ;;  %p223_p6 = pnand %p222_p5, %p216_p2 }
 0x102   :  { %v121_v15 = vpop.f32.mrb[0].mxu0 }
 0x103   :  { %v122_v16 = vadd.f32 %v121_v15, %v56_v13  ;;  %v123_v17 = vpop.f32.mrb[1].mxu0 }
 0x104   :  { %v124_v18 = vadd.f32 %v123_v17, %v60_v14  ;;  %v125_v19 = vpop.f32.mrb[2].mxu0 }
 0x105   :  { %130 = vst [vmem:[#allocation7] sm:$0xff] %v122_v16  ;;  %v126_v20 = vadd.f32 %v125_v19, %v56_v13  ;;  %v127_v21 = vpop.f32.mrb[3].mxu0 }
 0x106   :  { %131 = vst [vmem:[#allocation7 + $0x8] sm:$0xff] %v124_v18  ;;  %v128_v22 = vadd.f32 %v127_v21, %v60_v14 }
 0x107   :  { %132 = vst [vmem:[#allocation7 + $0x10] sm:$0xff] %v126_v20 }
 0x108   :  { %133 = vst [vmem:[#allocation7 + $0x18] sm:$0xff] %v128_v22 }
 0x109   :  { %226 = shalt.err (!%p223_p6)
}
 0x10a   :  { %s227_s15 = scalar_lea.hbm %s313_s3, 512 }
 0x10b   :  { %p228_p7 = scmp.ne.s32.totalorder %s313_s3, %s227_s15  ;;  %p231_p8 = scmp.lt.u32.totalorder %s227_s15, %s313_s3 }
 0x10d   :  { %p233_p9 = pnand %p231_p8, %p228_p7 }
 0x10f   :  { %236 = shalt.err (!%p233_p9)
}
 0x110   :  { %s249_s20 = smov 256   ;;  %s250_s21 = smov 16  }
 0x111   :  { %145 = dma.vmem_to_hbm [thread:$0]  %s140_s12, 512, %s313_s3, [#allocation4], %s249_s20, %s249_s20, %s250_s21  }
 0x112   :  { %241 = dma.done.wait [#allocation4], 512  }
 0x113   :  { %242 = vsyncadd [#allocation4], 4294966784 }
 0x114   :  { %149 = vsyncpa [#allocation3], 1 }
 0x115   :  { %150 = vsyncpa [#allocation6], 1 }
 0x116   :  { %151 = vsyncpa [#allocation4], 1 }

</bundles_post_ra>
